<compile_context>
chip_gen: v6e
topology: v6e:2x2x1
jax: 0.10.0
libtpu: 0.0.40
codegen_flags: <defaults>
</compile_context>

<pallas_src>
import functools

import jax
import jax.numpy as jnp
from jax.experimental import pallas as pl
from jax.experimental.pallas import tpu as pltpu


# ---------------------------------------------------------------------------
# Kernels
# ---------------------------------------------------------------------------
def _norm_kernel(x_ref, w_ref, b_ref, y_ref, stats_ref, *, eps, affine, inv_t):
    """Normalize Bblk batch elements per grid step.

    x_ref    : (Bblk, T, C)  input block
    w_ref    : (1, C)        affine weight (broadcast)
    b_ref    : (1, C)        affine bias   (broadcast)
    y_ref    : (Bblk, T, C)  normalized output
    stats_ref: (Bblk, 2, C)  [mean ; std] per (batch, channel), float32
    """
    xf = x_ref[...].astype(jnp.float32)                     # (Bblk, T, C)

    # Single-pass statistics (biased variance, unbiased=False in PyTorch ref).
    s1 = jnp.sum(xf, axis=1, keepdims=True)                 # (Bblk, 1, C)
    s2 = jnp.sum(xf * xf, axis=1, keepdims=True)            # (Bblk, 1, C)
    mean = s1 * inv_t
    var = jnp.maximum(s2 * inv_t - mean * mean, 0.0)        # clamp: cancellation safety
    std = jnp.sqrt(var + eps)
    inv_std = 1.0 / std                                     # exact recip, tiny slab only

    if affine:
        w = w_ref[...].astype(jnp.float32)                  # (1, C) -> bcast (Bblk,1,C)
        b = b_ref[...].astype(jnp.float32)
        scale = inv_std * w                                 # (Bblk, 1, C)
        shift = b - mean * scale
    else:
        scale = inv_std
        shift = -mean * inv_std

    # One wide FMA pass over the (T, C) tile; no wide divide.
    y_ref[...] = (xf * scale + shift).astype(y_ref.dtype)
    stats_ref[:, 0:1, :] = mean.astype(stats_ref.dtype)
    stats_ref[:, 1:2, :] = std.astype(stats_ref.dtype)


def _denorm_kernel(x_ref, stats_ref, w_ref, b_ref, y_ref, *, eps, affine):
    """Inverse transform for Bblk batch elements per grid step."""
    xf = x_ref[...].astype(jnp.float32)                     # (Bblk, T, C)
    mean = stats_ref[:, 0:1, :].astype(jnp.float32)         # (Bblk, 1, C)
    std = stats_ref[:, 1:2, :].astype(jnp.float32)          # (Bblk, 1, C)

    if affine:
        w = w_ref[...].astype(jnp.float32)                  # (1, C)
        b = b_ref[...].astype(jnp.float32)
        # NOTE: divide by (w + eps*eps) matches the PyTorch RevIN exactly; a
        # learned weight near -eps^2 would blow up -- intentional, do not "fix".
        inv_w = 1.0 / (w + eps * eps)                       # tiny slab only
        scale = std * inv_w                                 # (Bblk, 1, C)
        shift = mean - b * scale                            # y = (x-b)*inv_w*std + mean
    else:
        scale = std
        shift = mean

    # Single wide FMA pass instead of sub / div / mul / add.
    y_ref[...] = (xf * scale + shift).astype(y_ref.dtype)


# ---------------------------------------------------------------------------
# Block-size selection
# ---------------------------------------------------------------------------
def _pick_bblk(B, T, C, itemsize, target_bytes=2 * 1024 * 1024):
    """Largest divisor of B whose (Bblk, T, C) block stays within ~target_bytes,
    preferring a grid of at least 2 steps (v7x has 2 TensorCores)."""
    per_batch = max(1, T * C * itemsize)
    max_b = max(1, target_bytes // per_batch)
    best = 1
    for d in range(1, B + 1):
        if B % d == 0 and d <= max_b:
            best = d
    if B // best < 2 and B >= 2:
        cand = [d for d in range(1, B + 1)
                if B % d == 0 and B // d >= 2 and d <= max_b]
        if cand:
            best = max(cand)
    return best


_COMPILER_PARAMS = pltpu.CompilerParams(
    dimension_semantics=("parallel",),
    vmem_limit_bytes=32 * 1024 * 1024,
)


# ---------------------------------------------------------------------------
# Functional wrappers (stateless; preferred for jit/vmap/grad composition)
# ---------------------------------------------------------------------------
def revin_norm(x, weight, bias, *, eps, affine):
    """Returns (y, stats) where stats is (B, 2, C) float32 = [mean ; std]."""
    B, T, C = x.shape
    bblk = _pick_bblk(B, T, C, jnp.dtype(x.dtype).itemsize)
    grid = (B // bblk,)
    kernel = functools.partial(_norm_kernel, eps=float(eps), affine=affine,
                               inv_t=1.0 / float(T))
    y, stats = pl.pallas_call(
        kernel,
        out_shape=(
            jax.ShapeDtypeStruct((B, T, C), x.dtype),
            jax.ShapeDtypeStruct((B, 2, C), jnp.float32),
        ),
        grid_spec=pltpu.PrefetchScalarGridSpec(
            num_scalar_prefetch=0,
            grid=grid,
            in_specs=[
                pl.BlockSpec((bblk, T, C), lambda i: (i, 0, 0)),
                pl.BlockSpec((1, C), lambda i: (0, 0)),
                pl.BlockSpec((1, C), lambda i: (0, 0)),
            ],
            out_specs=[
                pl.BlockSpec((bblk, T, C), lambda i: (i, 0, 0)),
                pl.BlockSpec((bblk, 2, C), lambda i: (i, 0, 0)),
            ],
        ),
        compiler_params=_COMPILER_PARAMS,
    )(x, weight, bias)
    return y, stats


def revin_denorm(x, stats, weight, bias, *, eps, affine):
    B, T, C = x.shape
    bblk = _pick_bblk(B, T, C, jnp.dtype(x.dtype).itemsize)
    grid = (B // bblk,)
    kernel = functools.partial(_denorm_kernel, eps=float(eps), affine=affine)
    y = pl.pallas_call(
        kernel,
        out_shape=jax.ShapeDtypeStruct((B, T, C), x.dtype),
        grid_spec=pltpu.PrefetchScalarGridSpec(
            num_scalar_prefetch=0,
            grid=grid,
            in_specs=[
                pl.BlockSpec((bblk, T, C), lambda i: (i, 0, 0)),
                pl.BlockSpec((bblk, 2, C), lambda i: (i, 0, 0)),
                pl.BlockSpec((1, C), lambda i: (0, 0)),
                pl.BlockSpec((1, C), lambda i: (0, 0)),
            ],
            out_specs=pl.BlockSpec((bblk, T, C), lambda i: (i, 0, 0)),
        ),
        compiler_params=_COMPILER_PARAMS,
    )(x, stats, weight, bias)
    return y


# ---------------------------------------------------------------------------
# Module-like wrapper (mirrors the PyTorch RevIN interface)
# ---------------------------------------------------------------------------
class RevINPallas:
    """Pallas TPU implementation of RevIN forward (mode='norm' / 'denorm').

    subtract_last is not supported (default False in the PyTorch module).
    Affine params are initialized deterministically (weight=1, bias=0).
    """

    def __init__(self, num_features: int, eps: float = 1e-5, affine: bool = True,
                 subtract_last: bool = False, **kwargs):
        # TODO(synk): subtract_last=True path not implemented (module default False).
        assert not subtract_last, "subtract_last=True not implemented"
        self.num_features = num_features
        self.eps = float(eps)
        self.affine = affine
        self.affine_weight = jnp.ones((1, num_features), jnp.float32)
        self.affine_bias = jnp.zeros((1, num_features), jnp.float32)
        # Stats saved by mode='norm', consumed by mode='denorm' (stateful, like
        # the PyTorch module; prefer the functional revin_norm/revin_denorm for
        # jit/vmap/grad composition).
        self.stats = None
        self.mean = None
        self.stdev = None

    def norm(self, x):
        B, T, C = x.shape
        assert C == self.num_features
        y, stats = revin_norm(x, self.affine_weight, self.affine_bias,
                              eps=self.eps, affine=self.affine)
        self.stats = stats
        self.mean = stats[:, 0:1, :]
        self.stdev = stats[:, 1:2, :]
        return y

    def denorm(self, x):
        assert self.stats is not None, "call mode='norm' before mode='denorm'"
        return revin_denorm(x, self.stats, self.affine_weight, self.affine_bias,
                            eps=self.eps, affine=self.affine)

    def __call__(self, x, mode: str):
        if mode == "norm":
            return self.norm(x)
        elif mode == "denorm":
            return self.denorm(x)
        raise NotImplementedError(mode)


# ---------------------------------------------------------------------------
# Pure-JAX reference (mirrors the PyTorch forward) for a correctness check.
# ---------------------------------------------------------------------------
def _ref_norm(x, w, b, eps):
    mean = jnp.mean(x, axis=1, keepdims=True)
    std = jnp.sqrt(jnp.var(x, axis=1, keepdims=True) + eps)
    y = (x - mean) / std
    y = y * w.reshape(1, 1, -1) + b.reshape(1, 1, -1)
    return y, mean, std


def _ref_denorm(x, mean, std, w, b, eps):
    y = x - b.reshape(1, 1, -1)
    y = y / (w.reshape(1, 1, -1) + eps * eps)
    y = y * std + mean
    return y


if __name__ == "__main__":
    key = jax.random.PRNGKey(0)
    B, T, C = 2, 8, 4
    x = jax.random.normal(key, (B, T, C), dtype=jnp.float32) * 3.0 + 1.5

    revin = RevINPallas(num_features=C, eps=1e-5, affine=True)

    # mode='norm'
    y_norm = revin(x, "norm")
    jax.block_until_ready(y_norm)

    # mode='denorm' (round-trip)
    y_denorm = revin(y_norm, "denorm")
    jax.block_until_ready(y_denorm)

    # Check against pure-JAX reference.
    w = revin.affine_weight.reshape(-1)
    b = revin.affine_bias.reshape(-1)
    ref_y, ref_mean, ref_std = _ref_norm(x, w, b, revin.eps)
    ref_back = _ref_denorm(ref_y, ref_mean, ref_std, w, b, revin.eps)

    assert jnp.allclose(y_norm, ref_y, atol=1e-5, rtol=1e-5)
    assert jnp.allclose(revin.mean, ref_mean, atol=1e-5, rtol=1e-5)
    assert jnp.allclose(revin.stdev, ref_std, atol=1e-5, rtol=1e-5)
    assert jnp.allclose(y_denorm, ref_back, atol=1e-5, rtol=1e-5)
    # Round-trip should recover the original input.
    assert jnp.allclose(y_denorm, x, atol=1e-3, rtol=1e-3)

    print("KERNEL_OK")
</pallas_src>

<mosaic_0001>
module attributes {stable_mosaic.version = 11 : i64} {
  func.func @_norm_kernel(%arg0: i32, %arg1: memref<1x8x4xf32, #tpu.memory_space<vmem>>, %arg2: memref<1x4xf32, #tpu.memory_space<vmem>>, %arg3: memref<1x4xf32, #tpu.memory_space<vmem>>, %arg4: memref<1x8x4xf32, #tpu.memory_space<vmem>>, %arg5: memref<1x2x4xf32, #tpu.memory_space<vmem>>) attributes {dimension_semantics = [#tpu.dimension_semantics<parallel>], iteration_bounds = array<i64: 2>, scalar_prefetch = 0 : i64, scratch_operands = 0 : i64, tpu.core_type = #tpu.core_type<tc>, window_params = [{transform_indices = @transform_0, window_bounds = array<i64: 1, 8, 4>}, {pipeline_mode = #tpu.pipeline_mode<synchronous>, transform_indices = @transform_1, window_bounds = array<i64: 1, 4>}, {pipeline_mode = #tpu.pipeline_mode<synchronous>, transform_indices = @transform_2, window_bounds = array<i64: 1, 4>}, {transform_indices = @transform_3, window_bounds = array<i64: 1, 8, 4>}, {transform_indices = @transform_4, window_bounds = array<i64: 1, 2, 4>}]} {
    %c0 = arith.constant 0 : index
    %c0_0 = arith.constant 0 : index
    %c0_1 = arith.constant 0 : index
    %0 = vector.load %arg1[%c0, %c0_0, %c0_1] : memref<1x8x4xf32, #tpu.memory_space<vmem>>, vector<1x8x4xf32>
    %cst = arith.constant dense<0.000000e+00> : vector<1x4xf32>
    %1 = vector.multi_reduction <add>, %0, %cst [1] : vector<1x8x4xf32> to vector<1x4xf32>
    %2 = vector.shape_cast %1 : vector<1x4xf32> to vector<1x1x4xf32>
    %3 = arith.mulf %0, %0 : vector<1x8x4xf32>
    %cst_2 = arith.constant dense<0.000000e+00> : vector<1x4xf32>
    %4 = vector.multi_reduction <add>, %3, %cst_2 [1] : vector<1x8x4xf32> to vector<1x4xf32>
    %5 = vector.shape_cast %4 : vector<1x4xf32> to vector<1x1x4xf32>
    %cst_3 = arith.constant 1.250000e-01 : f32
    %6 = vector.broadcast %cst_3 : f32 to vector<1x1x4xf32>
    %7 = arith.mulf %2, %6 : vector<1x1x4xf32>
    %cst_4 = arith.constant 1.250000e-01 : f32
    %8 = vector.broadcast %cst_4 : f32 to vector<1x1x4xf32>
    %9 = arith.mulf %5, %8 : vector<1x1x4xf32>
    %10 = arith.mulf %7, %7 : vector<1x1x4xf32>
    %11 = arith.subf %9, %10 : vector<1x1x4xf32>
    %cst_5 = arith.constant 0.000000e+00 : f32
    %12 = vector.broadcast %cst_5 : f32 to vector<1x1x4xf32>
    %13 = arith.maximumf %11, %12 : vector<1x1x4xf32>
    %cst_6 = arith.constant 9.99999974E-6 : f32
    %14 = vector.broadcast %cst_6 : f32 to vector<1x1x4xf32>
    %15 = arith.addf %13, %14 : vector<1x1x4xf32>
    %16 = math.sqrt %15 : vector<1x1x4xf32>
    %cst_7 = arith.constant 1.000000e+00 : f32
    %17 = vector.broadcast %cst_7 : f32 to vector<1x1x4xf32>
    %18 = arith.divf %17, %16 : vector<1x1x4xf32>
    %c0_8 = arith.constant 0 : index
    %c0_9 = arith.constant 0 : index
    %19 = vector.load %arg2[%c0_8, %c0_9] : memref<1x4xf32, #tpu.memory_space<vmem>>, vector<1x4xf32>
    %c0_10 = arith.constant 0 : index
    %c0_11 = arith.constant 0 : index
    %20 = vector.load %arg3[%c0_10, %c0_11] : memref<1x4xf32, #tpu.memory_space<vmem>>, vector<1x4xf32>
    %21 = vector.shape_cast %19 : vector<1x4xf32> to vector<1x1x4xf32>
    %22 = arith.mulf %18, %21 : vector<1x1x4xf32>
    %23 = arith.mulf %7, %22 : vector<1x1x4xf32>
    %24 = vector.shape_cast %20 : vector<1x4xf32> to vector<1x1x4xf32>
    %25 = arith.subf %24, %23 : vector<1x1x4xf32>
    %26 = vector.broadcast %22 : vector<1x1x4xf32> to vector<1x8x4xf32>
    %27 = arith.mulf %0, %26 : vector<1x8x4xf32>
    %28 = vector.broadcast %25 : vector<1x1x4xf32> to vector<1x8x4xf32>
    %29 = arith.addf %27, %28 : vector<1x8x4xf32>
    %c0_12 = arith.constant 0 : index
    %c0_13 = arith.constant 0 : index
    %c0_14 = arith.constant 0 : index
    %30 = vector.load %arg4[%c0_12, %c0_13, %c0_14] : memref<1x8x4xf32, #tpu.memory_space<vmem>>, vector<1x8x4xf32>
    tpu.vector_store %arg4[%c0_12, %c0_13, %c0_14], %29 {strides = array<i32>} : memref<1x8x4xf32, #tpu.memory_space<vmem>>, vector<1x8x4xf32>,
    %c0_15 = arith.constant 0 : index
    %c0_16 = arith.constant 0 : index
    %c0_17 = arith.constant 0 : index
    %31 = vector.load %arg5[%c0_15, %c0_16, %c0_17] : memref<1x2x4xf32, #tpu.memory_space<vmem>>, vector<1x1x4xf32>
    tpu.vector_store %arg5[%c0_15, %c0_16, %c0_17], %7 {strides = array<i32>} : memref<1x2x4xf32, #tpu.memory_space<vmem>>, vector<1x1x4xf32>,
    %c0_18 = arith.constant 0 : index
    %c1 = arith.constant 1 : index
    %c0_19 = arith.constant 0 : index
    %32 = vector.load %arg5[%c0_18, %c1, %c0_19] : memref<1x2x4xf32, #tpu.memory_space<vmem>>, vector<1x1x4xf32>
    tpu.vector_store %arg5[%c0_18, %c1, %c0_19], %16 {strides = array<i32>} : memref<1x2x4xf32, #tpu.memory_space<vmem>>, vector<1x1x4xf32>,
    return
  }
  func.func @transform_0(%arg0: i32) -> (i32, i32, i32) {
    %c0_i32 = arith.constant 0 : i32
    %c0_i32_0 = arith.constant 0 : i32
    %c0_i32_1 = arith.constant 0 : i32
    return %arg0, %c0_i32, %c0_i32_0 : i32, i32, i32
  }
  func.func @transform_1(%arg0: i32) -> (i32, i32) {
    %c0_i32 = arith.constant 0 : i32
    %c0_i32_0 = arith.constant 0 : i32
    %c0_i32_1 = arith.constant 0 : i32
    return %c0_i32, %c0_i32_0 : i32, i32
  }
  func.func @transform_2(%arg0: i32) -> (i32, i32) {
    %c0_i32 = arith.constant 0 : i32
    %c0_i32_0 = arith.constant 0 : i32
    %c0_i32_1 = arith.constant 0 : i32
    return %c0_i32, %c0_i32_0 : i32, i32
  }
  func.func @transform_3(%arg0: i32) -> (i32, i32, i32) {
    %c0_i32 = arith.constant 0 : i32
    %c0_i32_0 = arith.constant 0 : i32
    %c0_i32_1 = arith.constant 0 : i32
    return %arg0, %c0_i32, %c0_i32_0 : i32, i32, i32
  }
  func.func @transform_4(%arg0: i32) -> (i32, i32, i32) {
    %c0_i32 = arith.constant 0 : i32
    %c0_i32_0 = arith.constant 0 : i32
    %c0_i32_1 = arith.constant 0 : i32
    return %arg0, %c0_i32, %c0_i32_0 : i32, i32, i32
  }
}

</mosaic_0001>

<bundles_post_ra>
// kernel: tpu_custom_call.1
= control target key start
LH: loop header
LB: loop body
LE: loop exit
PB: predicated region body
PF: predicated region fallthrough
CT: control target
= control target key end

     0   :  { %10 = vsyncpa [#allocation3], 0  ;;  %s633_s0 = inlined_call_operand.vmem [shape: f32[2,8,4], index: 0, kind: input, shape index: {}]   ;;  %s634_s1 = inlined_call_operand.vmem [shape: f32[1,4], index: 1, kind: input, shape index: {}]   ;;  %s635_s2 = inlined_call_operand.vmem [shape: f32[1,4], index: 2, kind: input, shape index: {}]   ;;  %s636_s3 = inlined_call_operand.vmem [shape: f32[2,8,4], index: 3, kind: output, shape index: {0}]   ;;  %s637_s4 = inlined_call_operand.hbm [shape: f32[2,2,4], index: 4, kind: output, shape index: {1}]  }
   0x1   :  { %12 = vsyncpa [#allocation3 + $0x1], 0  ;;  %s503_s15 = smov 0   ;;  %s505_s16 = smov 0  }
   0x2   :  { %s507_s17 = smov 0   ;;  %s509_s18 = smov 0  }
   0x3 LB: > { %s524_s19 = sadd.s32 4294967295, %s475_s18   ;;  %s361_s20 = sadd.s32 4294967294, %s475_s18   ;;  %s475_s18 = sphi %s509_s18, %s643_s18   ;;  %s471_s17 = sphi %s507_s17, %s642_s17   ;;  %s467_s16 = sphi %s505_s16, %s641_s16   ;;  %s463_s15 = sphi %s503_s15, %s640_s15  }
   0x4   : > { %s528_s21 = sadd.s32 1, %s475_s18   ;;  %s119_s22 = sadd.s32 1, %s471_s17 }
   0x5   : > { %s116_s23 = ssub.s32 %s475_s18, %s528_s21  ;;  %p129_p0 = scmp.ne.s32.totalorder %s471_s17, %s467_s16 }
   0x6   : > { %p117_p1 = scmp.eq.s32.totalorder %s116_s23, 0  ;;  %p130_p2 = scmp.eq.s32.totalorder %s524_s19, 1 }
   0x7   : > { %p135_p3 = scmp.ne.s32.totalorder %s467_s16, %s463_s15  ;;  %p136_p4 = scmp.eq.s32.totalorder %s361_s20, 1 }
   0x8   : > { %s539_s24 = scalar_select %p117_p1, %s471_s17, %s119_s22  }
   0x9   : > { %p541_p5 = por %p130_p2, %p129_p0  ;;  %p545_p6 = por %p136_p4, %p135_p3 }
   0xa   : > { %p364_p7 = scmp.ge.s32.totalorder %s475_s18, 1  ;;  %p167_p8 = scmp.lt.s32.totalorder %s475_s18, 3 }
   0xc   : > { %p168_p9 = pnand %p364_p7, %p167_p8 }
   0xd   : > { %p196_p10 = scmp.lt.s32.totalorder (!%p168_p9), %s524_s19, 1  ;;  %s193_s6 = sand.u32 (!%p168_p9), 1, %s467_s16  }
   0xe   : > { %171 = sbr.rel (%p168_p9) target bundleno = 90 (0x5a), region = 32  ;;  %s365_s7 = sshll.u32 (!%p168_p9), %s193_s6, 1 }
   0xf   : > { %s195_s8 = scalar_lea.vmem (!%p168_p9), [#allocation2], %s365_s7  ;;  %s369_s10 = sshll.u32 (!%p168_p9), %s524_s19, 5 }
  0x10   : > { %s278_s9 = sshll.u32 (!%p168_p9), %s195_s8, 4  ;;  %s578_s13 = scalar_lea.hbm (!%p168_p9), %s637_s4, %s369_s10  ;;  %s573_s9 = int_to_ptr.vmem [resolvable:$true] %s278_s9 }
  0x11   : > { %s262_s14 = scalar_lea.sflag (!%p168_p9), [#allocation3], %s193_s6  ;;  %s477_s20 = smov (!%p168_p9), [#allocation2]  }
  0x12   : > { %s419_s22 = sshll.u32 (!%p168_p9), %s477_s20, 4  ;;  %s420_s22 = int_to_ptr.vmem [resolvable:$false] %s419_s22 }
  0x13   : > { %s553_s27 = scalar_select %p196_p10, %s524_s19, 1  ;;  %vm205_vm0 = vcmask 31744   ;;  %vm254_vm1 = vcmask 24576  }
  0x14   : > { %s415_s19 = scalar_lea.vmem %s573_s9, 32  ;;  %s421_s23 = scalar_lea.vmem %s420_s22, 64 }
  0x15   : > { %s366_s28 = sshll.u32 %s553_s27, 3  ;;  %p416_p11 = scmp.ne.s32.totalorder %s573_s9, %s415_s19 }
  0x16   : > { %s199_s5 = scalar_lea.vmem %s633_s0, %s366_s28  ;;  %p422_p0 = scmp.lt.s32.totalorder %s573_s9, %s420_s22 }
  0x17   : > { %v561_v0 = vld [vmem:[%s199_s5] sm:$0xff]  ;;  %p417_p12 = pnand %p416_p11, %p541_p5  ;;  %p423_p1 = scmp.lt.s32.totalorder %s421_s23, %s415_s19 }
  0x18   : > { %v206_v1 = vsel %vm205_vm0, %v561_v0, 0.0  ;;  %v213_v2 = vmul.f32 %v561_v0, %v561_v0 }
  0x19   : > { %v207_v3 = vrot.slane %v206_v1, 4  ;;  %p418_p13 = pneg %p417_p12  ;;  %p424_p2 = por %p423_p1, %p422_p0 }
  0x1a   : > { %v214_v4 = vsel %vm205_vm0, %v213_v2, 0.0 }
  0x1b   : > { %v208_v5 = vadd.f32 %v207_v3, %v206_v1  ;;  %v215_v6 = vrot.slane %v214_v4, 4  ;;  %p425_p3 = pnand %p424_p2, %p418_p13 }
  0x1d   : > { %v209_v7 = vrot.slane %v208_v5, 2  ;;  %v216_v8 = vadd.f32 %v215_v6, %v214_v4 }
  0x1f   : > { %v210_v9 = vadd.f32 %v209_v7, %v208_v5  ;;  %v217_v10 = vrot.slane %v216_v8, 2 }
  0x21   : > { %v211_v11 = vrot.slane %v210_v9, 1  ;;  %v218_v12 = vadd.f32 %v217_v10, %v216_v8 }
  0x23   : > { %v212_v13 = vadd.f32 %v211_v11, %v210_v9  ;;  %v219_v14 = vrot.slane %v218_v12, 1 }
  0x25   : > { %v220_v15 = vadd.f32 %v219_v14, %v218_v12  ;;  %v221_v16 = vmul.f32 0.125, %v212_v13 }
  0x27   : > { %v222_v17 = vmul.f32 0.125, %v220_v15  ;;  %v223_v18 = vmul.f32 %v221_v16, %v221_v16  ;;  %255 = vst.msk [vmem:[%s195_s8] sm:$0x1] %vm254_vm1, %v221_v16 }
  0x29   : > { %v224_v19 = vsub.f32 %v222_v17, %v223_v18 }
  0x2b   : > { %v225_v20 = vmax.f32 %v224_v19, 0.0 }
  0x2d   : > { %v226_v21 = vadd.f32 1e-05, %v225_v20 }
  0x2f   : > { %411 = vrsqrt.f32 %v226_v21  ;;  %vm229_vm2 = vcmp.eq.f32.partialorder %v226_v21, inf  ;;  %v232_v23 = vand.u32 2147483648, %v226_v21  ;;  %vm231_vm3 = vcmp.eq.f32.partialorder %v226_v21, 0.0 }
  0x3c   : > { %v412_v22 = vpop.eup %411 }
  0x3d   : > { %v228_v24 = vmul.f32 %v412_v22, %v226_v21 }
  0x3f   : > { %v230_v25 = vsel %vm229_vm2, %v226_v21, %v228_v24 }
  0x40   : > { %v233_v26 = vsel %vm231_vm3, %v232_v23, %v230_v25 }
  0x41   : > { %413 = vrcp.f32 %v233_v26  ;;  %256 = vst.msk [vmem:[%s195_s8 + $0x1] sm:$0x1] %vm254_vm1, %v233_v26 }
  0x42   : > { %428 = shalt.err (!%p425_p3)
}
  0x43   : > { %s429_s29 = scalar_lea.hbm %s578_s13, 32  ;;  %s433_s6 = scalar_lea.hbm %s637_s4, 64 }
  0x44   : > { %p430_p4 = scmp.ne.s32.totalorder %s578_s13, %s429_s29  ;;  %p434_p9 = scmp.lt.s32.totalorder %s578_s13, %s637_s4 }
  0x45   : > { %p435_p10 = scmp.lt.s32.totalorder %s433_s6, %s429_s29 }
  0x46   : > { %p431_p7 = pnand %p430_p4, %p541_p5 }
  0x47   : > { %p436_p11 = por %p435_p10, %p434_p9 }
  0x48   : > { %p432_p8 = pneg %p431_p7 }
  0x4a   : > { %p437_p12 = pnand %p436_p11, %p432_p8 }
  0x4c   : > { %440 = shalt.err (!%p437_p12)
}
  0x4d   : > { %372 = dma.vmem_to_hbm [thread:$0]  (%p541_p5), %s573_s9, 32, %s578_s13, %s262_s14   ;;  %v241_v27 = vlaneseq  ;;  %v236_v29 = vld [vmem:[%s634_s1] sm:$0x1] }
  0x4e   : > { %v414_v31 = vpop.eup %413  ;;  %v237_v33 = vld [vmem:[%s635_s2] sm:$0x1]  ;;  %s203_s13 = scalar_lea.vmem %s636_s3, %s366_s28 }
  0x4f   : > { %v242_v28 = vshrl.u32 %v241_v27, 7  ;;  %v238_v32 = vmul.f32 %v414_v31, %v236_v29 }
  0x51   : > { %v243_v30 = vsub.s32 0, %v242_v28  ;;  %v239_v34 = vmul.f32 %v238_v32, %v221_v16 }
  0x53   : > { %v244_v35 = vrot.slane %v238_v32, %v243_v30  ;;  %v240_v36 = vsub.f32 %v237_v33, %v239_v34 }
  0x55   : > { %v245_v37 = vmul.f32 %v244_v35, %v561_v0  ;;  %v250_v38 = vrot.slane %v240_v36, %v243_v30 }
  0x57   : > { %v252_v39 = vadd.f32 %v250_v38, %v245_v37 }
  0x59   : > { %253 = vst.msk [vmem:[%s203_s13] sm:$0xff] %vm205_vm0, %v252_v39 }
  0x5a PF: > { %p378_p5 = scmp.ge.s32.totalorder %s475_s18, 2  ;;  %s297_s14 = sand.u32 1, %s463_s15  }
  0x5b   : > { %s298_s20 = scalar_lea.sflag [#allocation3], %s297_s14 }
  0x5c   : > { %p375_p13 = pnand %p378_p5, %p545_p6 }
  0x5e   : > { %p376_p0 = pneg %p375_p13 }
  0x60   : > { %458 = dma.done.wait (%p376_p0), %s298_s20, 32  }
  0x61   : > { %460 = vsyncadd (%p376_p0), %s298_s20, 4294967264  ;;  %p15_p1 = scmp.ge.s32.totalorder %s528_s21, 4   ;;  %s640_s15 = smov %s467_s16 }
  0x62   : > { %s641_s16 = smov %s471_s17  ;;  %s642_s17 = smov %s539_s24 }
  0x63   : > { %s643_s18 = smov %s528_s21  ;;  %17 = sbr.rel (!%p15_p1) target bundleno = 3 (0x3), region = 79 }
  0x68   :  { %303 = vsyncpa [#allocation3], 1 }
  0x69   :  { %305 = vsyncpa [#allocation3 + $0x1], 1 }

</bundles_post_ra>
